<compile_context>
chip_gen: v5e
topology: v5e:2x2
jax: 0.10.0
libtpu: 0.0.40
codegen_flags: <defaults>
</compile_context>

<pallas_src>
import functools

import jax
import jax.numpy as jnp
from jax.experimental import pallas as pl
from jax.experimental.pallas import tpu as pltpu

LANES = 128
SUBLANES = 8
MIN_ROWS = 16          # minimal row extent handed to the kernel (f32/bf16 safe)
MAX_TILE_ROWS = 4096   # (4096, 128) f32 = 2 MiB per input buffer
NUM_CORES = 2          # leading "parallel" grid axis (2 TCs on v7x)


def _mae_reduce_kernel(pred_ref, tgt_ref, sum_ref, cnt_ref, *,
                       rows_total, tile_rows, tiles_per_core):
    c = pl.program_id(0)   # core / partial-result slot ("parallel")
    i = pl.program_id(1)   # streaming step within this core's slice ("arbitrary")

    @pl.when(i == 0)
    def _init():
        sum_ref[...] = jnp.zeros_like(sum_ref)
        cnt_ref[...] = jnp.zeros_like(cnt_ref)

    t = tgt_ref[...].astype(jnp.float32)
    o = pred_ref[...].astype(jnp.float32)

    groups = tile_rows // SUBLANES

    def accumulate(valid):
        absdiff = jnp.where(valid, jnp.abs(t - o), 0.0)
        # (tile_rows,128) -> (8,128) via VPU adds over whole vregs (no XLU),
        # accumulated into the resident per-core output block.
        sum_ref[0] += jnp.sum(absdiff.reshape(groups, SUBLANES, LANES), axis=0)
        cnt_ref[0] += jnp.sum(
            valid.astype(jnp.int32).reshape(groups, SUBLANES, LANES), axis=0)

    # Global (unclamped) block index and how many real rows it still covers.
    b = c * tiles_per_core + i
    rows_rem = rows_total - b * tile_rows

    @pl.when(rows_rem >= tile_rows)
    def _steady():
        # Hot path: no index arithmetic, just the NaN mask.
        accumulate(jnp.logical_not(jnp.isnan(t)))

    @pl.when(rows_rem < tile_rows)
    def _ragged():
        # Partial last block (OOB rows contain garbage) or a fully-duplicated
        # clamped block (rows_rem <= 0): mask by row index.
        row = jax.lax.broadcasted_iota(jnp.int32, (tile_rows, LANES), 0)
        accumulate(jnp.logical_and(row < rows_rem,
                                   jnp.logical_not(jnp.isnan(t))))


def mae_loss(output: jax.Array, target: jax.Array) -> jax.Array:
    """Masked MAE: mean(|target - output|) over positions where target is not NaN."""
    assert output.shape == target.shape
    o = output.reshape(-1)   # native dtype; cast to f32 inside the kernel
    t = target.reshape(-1)
    n = o.shape[0]

    if n == 0:
        # torch.mean over an empty tensor -> NaN
        return jnp.array(jnp.nan, dtype=jnp.float32)

    n_main = (n // LANES) * LANES  # 128-aligned prefix handled by the kernel

    # <=127-element tail folded in with plain jnp (avoids a full-array pad copy).
    if n_main < n:
        t_tail = t[n_main:].astype(jnp.float32)
        o_tail = o[n_main:].astype(jnp.float32)
        tail_valid = jnp.logical_not(jnp.isnan(t_tail))
        tail_sum = jnp.sum(jnp.where(tail_valid, jnp.abs(t_tail - o_tail), 0.0))
        tail_cnt = jnp.sum(tail_valid.astype(jnp.int32))
    else:
        tail_sum = jnp.zeros((), jnp.float32)
        tail_cnt = jnp.zeros((), jnp.int32)

    if n_main == 0:
        total_sum, total_cnt = tail_sum, tail_cnt
    else:
        rows = n_main // LANES
        o2 = o[:n_main].reshape(rows, LANES)
        t2 = t[:n_main].reshape(rows, LANES)

        # Tiny inputs: pad rows up to one (16,128) tile.  Target pad is NaN so
        # the padded rows are masked; at most 15*128 elements, negligible.
        if rows < MIN_ROWS:
            pad_rows = MIN_ROWS - rows
            o2 = jnp.pad(o2, ((0, pad_rows), (0, 0)))
            t2 = jnp.pad(t2, ((0, pad_rows), (0, 0)), constant_values=jnp.nan)
            rows = MIN_ROWS

        # Big tiles amortize per-step overhead; multiple of 16 keeps f32/bf16
        # sublane tiling happy; guaranteed <= rows since rows >= 16.
        tile_rows = min(MAX_TILE_ROWS,
                        ((pl.cdiv(rows, NUM_CORES) + 15) // 16) * 16)
        tiles_total = pl.cdiv(rows, tile_rows)
        tiles_per_core = pl.cdiv(tiles_total, NUM_CORES)
        last_block = tiles_total - 1

        def in_map(c, i):
            # Clamp so a dummy trailing block (odd tile count) never DMAs out
            # of bounds; its contribution is masked in-kernel (rows_rem <= 0).
            return (jnp.minimum(c * tiles_per_core + i, last_block), 0)

        kernel = functools.partial(
            _mae_reduce_kernel, rows_total=rows, tile_rows=tile_rows,
            tiles_per_core=tiles_per_core)

        itemsize = o2.dtype.itemsize + t2.dtype.itemsize
        vmem_limit = int(min(96 * 1024 * 1024,
                             2 * tile_rows * LANES * itemsize + (4 << 20)))

        sum_out, cnt_out = pl.pallas_call(
            kernel,
            out_shape=(
                jax.ShapeDtypeStruct((NUM_CORES, SUBLANES, LANES), jnp.float32),
                jax.ShapeDtypeStruct((NUM_CORES, SUBLANES, LANES), jnp.int32),
            ),
            grid_spec=pltpu.PrefetchScalarGridSpec(
                num_scalar_prefetch=0,
                grid=(NUM_CORES, tiles_per_core),
                in_specs=[
                    pl.BlockSpec((tile_rows, LANES), in_map),
                    pl.BlockSpec((tile_rows, LANES), in_map),
                ],
                out_specs=[
                    pl.BlockSpec((1, SUBLANES, LANES), lambda c, i: (c, 0, 0)),
                    pl.BlockSpec((1, SUBLANES, LANES), lambda c, i: (c, 0, 0)),
                ],
            ),
            compiler_params=pltpu.CompilerParams(
                dimension_semantics=("parallel", "arbitrary"),
                vmem_limit_bytes=vmem_limit,
            ),
        )(o2, t2)

        total_sum = jnp.sum(sum_out) + tail_sum
        total_cnt = jnp.sum(cnt_out) + tail_cnt

    # NaN for fully-masked input (0/0), matching torch.mean over an empty tensor.
    return total_sum / total_cnt.astype(jnp.float32)


def _ref_mae(output, target):
    valid = ~jnp.isnan(target)
    return jnp.sum(jnp.where(valid, jnp.abs(target - output), 0.0)) / jnp.sum(valid)


def _make_case(key, shape, p_nan):
    k1, k2, k3 = jax.random.split(key, 3)
    output = jax.random.normal(k1, shape, dtype=jnp.float32)
    target = jax.random.normal(k2, shape, dtype=jnp.float32)
    nan_mask = jax.random.bernoulli(k3, p=p_nan, shape=shape)
    target = jnp.where(nan_mask, jnp.nan, target)
    return output, target


if __name__ == "__main__":
    key = jax.random.PRNGKey(0)
    k_a, k_b, k_c = jax.random.split(key, 3)

    # Case 1: small (batch, seq, features), 128-aligned element count.
    out1, tgt1 = _make_case(k_a, (2, 8, 16), 0.25)
    loss1 = jax.block_until_ready(mae_loss(out1, tgt1))
    ref1 = _ref_mae(out1, tgt1)
    assert jnp.allclose(loss1, ref1, rtol=1e-5, atol=1e-6), (loss1, ref1)

    # Case 2: unaligned element count (exercises the jnp tail path + row pad).
    out2, tgt2 = _make_case(k_b, (3, 16, 29), 0.3)
    loss2 = jax.block_until_ready(mae_loss(out2, tgt2))
    ref2 = _ref_mae(out2, tgt2)
    assert jnp.allclose(loss2, ref2, rtol=1e-5, atol=1e-6), (loss2, ref2)

    # Case 3: larger unaligned case (exercises both cores + ragged last block).
    out3, tgt3 = _make_case(k_c, (4, 33, 37), 0.2)
    loss3 = jax.block_until_ready(mae_loss(out3, tgt3))
    ref3 = _ref_mae(out3, tgt3)
    assert jnp.allclose(loss3, ref3, rtol=1e-5, atol=1e-6), (loss3, ref3)

    print("KERNEL_OK")
</pallas_src>

<mosaic_0001>
module attributes {stable_mosaic.version = 11 : i64} {
  func.func @_mae_reduce_kernel(%arg0: i32, %arg1: i32, %arg2: memref<16x128xf32, #tpu.memory_space<vmem>>, %arg3: memref<16x128xf32, #tpu.memory_space<vmem>>, %arg4: memref<1x8x128xf32, #tpu.memory_space<vmem>>, %arg5: memref<1x8x128xi32, #tpu.memory_space<vmem>>) attributes {dimension_semantics = [#tpu.dimension_semantics<parallel>, #tpu.dimension_semantics<arbitrary>], iteration_bounds = array<i64: 2, 1>, scalar_prefetch = 0 : i64, scratch_operands = 0 : i64, tpu.core_type = #tpu.core_type<tc>, window_params = [{transform_indices = @transform_0, window_bounds = array<i64: 16, 128>}, {transform_indices = @transform_1, window_bounds = array<i64: 16, 128>}, {transform_indices = @transform_2, window_bounds = array<i64: 1, 8, 128>}, {transform_indices = @transform_3, window_bounds = array<i64: 1, 8, 128>}]} {
    %c0_i32 = arith.constant 0 : i32
    %0 = arith.cmpi eq, %arg1, %c0_i32 : i32
    %1 = arith.extui %0 : i1 to i32
    %c0_i32_0 = arith.constant 0 : i32
    %2 = arith.cmpi ne, %1, %c0_i32_0 : i32
    scf.if %2 {
      %cst = arith.constant 0.000000e+00 : f32
      %15 = vector.broadcast %cst : f32 to vector<1x8x128xf32>
      %c0_9 = arith.constant 0 : index
      %c0_10 = arith.constant 0 : index
      %c0_11 = arith.constant 0 : index
      %16 = vector.load %arg4[%c0_9, %c0_10, %c0_11] : memref<1x8x128xf32, #tpu.memory_space<vmem>>, vector<1x8x128xf32>
      tpu.vector_store %arg4[%c0_9, %c0_10, %c0_11], %15 {strides = array<i32>} : memref<1x8x128xf32, #tpu.memory_space<vmem>>, vector<1x8x128xf32>,
      %c0_i32_12 = arith.constant 0 : i32
      %17 = vector.broadcast %c0_i32_12 : i32 to vector<1x8x128xi32>
      %c0_13 = arith.constant 0 : index
      %c0_14 = arith.constant 0 : index
      %c0_15 = arith.constant 0 : index
      %18 = vector.load %arg5[%c0_13, %c0_14, %c0_15] : memref<1x8x128xi32, #tpu.memory_space<vmem>>, vector<1x8x128xi32>
      tpu.vector_store %arg5[%c0_13, %c0_14, %c0_15], %17 {strides = array<i32>} : memref<1x8x128xi32, #tpu.memory_space<vmem>>, vector<1x8x128xi32>,
    } else {
    }
    %c0 = arith.constant 0 : index
    %c0_1 = arith.constant 0 : index
    %3 = vector.load %arg3[%c0, %c0_1] : memref<16x128xf32, #tpu.memory_space<vmem>>, vector<16x128xf32>
    %c0_2 = arith.constant 0 : index
    %c0_3 = arith.constant 0 : index
    %4 = vector.load %arg2[%c0_2, %c0_3] : memref<16x128xf32, #tpu.memory_space<vmem>>, vector<16x128xf32>
    %c1_i32 = arith.constant 1 : i32
    %5 = arith.muli %arg0, %c1_i32 : i32
    %6 = arith.addi %5, %arg1 : i32
    %c16_i32 = arith.constant 16 : i32
    %7 = arith.muli %6, %c16_i32 : i32
    %c16_i32_4 = arith.constant 16 : i32
    %8 = arith.subi %c16_i32_4, %7 : i32
    %c16_i32_5 = arith.constant 16 : i32
    %9 = arith.cmpi sge, %8, %c16_i32_5 : i32
    %10 = arith.extui %9 : i1 to i32
    %c0_i32_6 = arith.constant 0 : i32
    %11 = arith.cmpi ne, %10, %c0_i32_6 : i32
    scf.if %11 {
      %15 = arith.cmpf one, %3, %3 : vector<16x128xf32>
      %cst = arith.constant dense<true> : vector<16x128xi1>
      %16 = arith.xori %15, %cst : vector<16x128xi1>
      %17 = arith.subf %3, %4 : vector<16x128xf32>
      %18 = math.absf %17 : vector<16x128xf32>
      %cst_9 = arith.constant 0.000000e+00 : f32
      %19 = vector.broadcast %cst_9 : f32 to vector<16x128xf32>
      %20 = arith.select %16, %18, %19 : vector<16x128xi1>, vector<16x128xf32>
      %c0_10 = arith.constant 0 : index
      %c0_11 = arith.constant 0 : index
      %c0_12 = arith.constant 0 : index
      %21 = vector.load %arg4[%c0_10, %c0_11, %c0_12] : memref<1x8x128xf32, #tpu.memory_space<vmem>>, vector<1x8x128xf32>
      %22 = vector.shape_cast %21 : vector<1x8x128xf32> to vector<8x128xf32>
      %23 = vector.shape_cast %20 : vector<16x128xf32> to vector<2x8x128xf32>
      %cst_13 = arith.constant dense<0.000000e+00> : vector<8x128xf32>
      %24 = vector.multi_reduction <add>, %23, %cst_13 [0] : vector<2x8x128xf32> to vector<8x128xf32>
      %25 = arith.addf %22, %24 : vector<8x128xf32>
      %c0_14 = arith.constant 0 : index
      %c0_15 = arith.constant 0 : index
      %c0_16 = arith.constant 0 : index
      %26 = vector.load %arg4[%c0_14, %c0_15, %c0_16] : memref<1x8x128xf32, #tpu.memory_space<vmem>>, vector<1x8x128xf32>
      %27 = vector.shape_cast %26 : vector<1x8x128xf32> to vector<8x128xf32>
      %28 = vector.shape_cast %25 : vector<8x128xf32> to vector<1x8x128xf32>
      tpu.vector_store %arg4[%c0_14, %c0_15, %c0_16], %28 {strides = array<i32>} : memref<1x8x128xf32, #tpu.memory_space<vmem>>, vector<1x8x128xf32>,
      %c0_17 = arith.constant 0 : index
      %c0_18 = arith.constant 0 : index
      %c0_19 = arith.constant 0 : index
      %29 = vector.load %arg5[%c0_17, %c0_18, %c0_19] : memref<1x8x128xi32, #tpu.memory_space<vmem>>, vector<1x8x128xi32>
      %30 = vector.shape_cast %29 : vector<1x8x128xi32> to vector<8x128xi32>
      %31 = arith.extui %16 : vector<16x128xi1> to vector<16x128xi32>
      %32 = vector.shape_cast %31 : vector<16x128xi32> to vector<2x8x128xi32>
      %cst_20 = arith.constant dense<0> : vector<8x128xi32>
      %33 = vector.multi_reduction <add>, %32, %cst_20 [0] : vector<2x8x128xi32> to vector<8x128xi32>
      %34 = arith.addi %30, %33 : vector<8x128xi32>
      %c0_21 = arith.constant 0 : index
      %c0_22 = arith.constant 0 : index
      %c0_23 = arith.constant 0 : index
      %35 = vector.load %arg5[%c0_21, %c0_22, %c0_23] : memref<1x8x128xi32, #tpu.memory_space<vmem>>, vector<1x8x128xi32>
      %36 = vector.shape_cast %35 : vector<1x8x128xi32> to vector<8x128xi32>
      %37 = vector.shape_cast %34 : vector<8x128xi32> to vector<1x8x128xi32>
      tpu.vector_store %arg5[%c0_21, %c0_22, %c0_23], %37 {strides = array<i32>} : memref<1x8x128xi32, #tpu.memory_space<vmem>>, vector<1x8x128xi32>,
    } else {
    }
    %c16_i32_7 = arith.constant 16 : i32
    %12 = arith.cmpi slt, %8, %c16_i32_7 : i32
    %13 = arith.extui %12 : i1 to i32
    %c0_i32_8 = arith.constant 0 : i32
    %14 = arith.cmpi ne, %13, %c0_i32_8 : i32
    scf.if %14 {
      %15 = tpu.iota {dimensions = array<i32: 0>} : vector<16x128xi32>
      %16 = vector.broadcast %8 : i32 to vector<16x128xi32>
      %17 = arith.cmpi slt, %15, %16 : vector<16x128xi32>
      %18 = arith.cmpf one, %3, %3 : vector<16x128xf32>
      %cst = arith.constant dense<true> : vector<16x128xi1>
      %19 = arith.xori %18, %cst : vector<16x128xi1>
      %20 = arith.andi %17, %19 : vector<16x128xi1>
      %21 = arith.subf %3, %4 : vector<16x128xf32>
      %22 = math.absf %21 : vector<16x128xf32>
      %cst_9 = arith.constant 0.000000e+00 : f32
      %23 = vector.broadcast %cst_9 : f32 to vector<16x128xf32>
      %24 = arith.select %20, %22, %23 : vector<16x128xi1>, vector<16x128xf32>
      %c0_10 = arith.constant 0 : index
      %c0_11 = arith.constant 0 : index
      %c0_12 = arith.constant 0 : index
      %25 = vector.load %arg4[%c0_10, %c0_11, %c0_12] : memref<1x8x128xf32, #tpu.memory_space<vmem>>, vector<1x8x128xf32>
      %26 = vector.shape_cast %25 : vector<1x8x128xf32> to vector<8x128xf32>
      %27 = vector.shape_cast %24 : vector<16x128xf32> to vector<2x8x128xf32>
      %cst_13 = arith.constant dense<0.000000e+00> : vector<8x128xf32>
      %28 = vector.multi_reduction <add>, %27, %cst_13 [0] : vector<2x8x128xf32> to vector<8x128xf32>
      %29 = arith.addf %26, %28 : vector<8x128xf32>
      %c0_14 = arith.constant 0 : index
      %c0_15 = arith.constant 0 : index
      %c0_16 = arith.constant 0 : index
      %30 = vector.load %arg4[%c0_14, %c0_15, %c0_16] : memref<1x8x128xf32, #tpu.memory_space<vmem>>, vector<1x8x128xf32>
      %31 = vector.shape_cast %30 : vector<1x8x128xf32> to vector<8x128xf32>
      %32 = vector.shape_cast %29 : vector<8x128xf32> to vector<1x8x128xf32>
      tpu.vector_store %arg4[%c0_14, %c0_15, %c0_16], %32 {strides = array<i32>} : memref<1x8x128xf32, #tpu.memory_space<vmem>>, vector<1x8x128xf32>,
      %c0_17 = arith.constant 0 : index
      %c0_18 = arith.constant 0 : index
      %c0_19 = arith.constant 0 : index
      %33 = vector.load %arg5[%c0_17, %c0_18, %c0_19] : memref<1x8x128xi32, #tpu.memory_space<vmem>>, vector<1x8x128xi32>
      %34 = vector.shape_cast %33 : vector<1x8x128xi32> to vector<8x128xi32>
      %35 = arith.extui %20 : vector<16x128xi1> to vector<16x128xi32>
      %36 = vector.shape_cast %35 : vector<16x128xi32> to vector<2x8x128xi32>
      %cst_20 = arith.constant dense<0> : vector<8x128xi32>
      %37 = vector.multi_reduction <add>, %36, %cst_20 [0] : vector<2x8x128xi32> to vector<8x128xi32>
      %38 = arith.addi %34, %37 : vector<8x128xi32>
      %c0_21 = arith.constant 0 : index
      %c0_22 = arith.constant 0 : index
      %c0_23 = arith.constant 0 : index
      %39 = vector.load %arg5[%c0_21, %c0_22, %c0_23] : memref<1x8x128xi32, #tpu.memory_space<vmem>>, vector<1x8x128xi32>
      %40 = vector.shape_cast %39 : vector<1x8x128xi32> to vector<8x128xi32>
      %41 = vector.shape_cast %38 : vector<8x128xi32> to vector<1x8x128xi32>
      tpu.vector_store %arg5[%c0_21, %c0_22, %c0_23], %41 {strides = array<i32>} : memref<1x8x128xi32, #tpu.memory_space<vmem>>, vector<1x8x128xi32>,
    } else {
    }
    return
  }
  func.func @transform_0(%arg0: i32, %arg1: i32) -> (i32, i32) {
    %c1_i32 = arith.constant 1 : i32
    %0 = arith.muli %arg0, %c1_i32 : i32
    %1 = arith.addi %0, %arg1 : i32
    %c0_i32 = arith.constant 0 : i32
    %2 = arith.minsi %1, %c0_i32 : i32
    %c0_i32_0 = arith.constant 0 : i32
    %c0_i32_1 = arith.constant 0 : i32
    return %2, %c0_i32_0 : i32, i32
  }
  func.func @transform_1(%arg0: i32, %arg1: i32) -> (i32, i32) {
    %c1_i32 = arith.constant 1 : i32
    %0 = arith.muli %arg0, %c1_i32 : i32
    %1 = arith.addi %0, %arg1 : i32
    %c0_i32 = arith.constant 0 : i32
    %2 = arith.minsi %1, %c0_i32 : i32
    %c0_i32_0 = arith.constant 0 : i32
    %c0_i32_1 = arith.constant 0 : i32
    return %2, %c0_i32_0 : i32, i32
  }
  func.func @transform_2(%arg0: i32, %arg1: i32) -> (i32, i32, i32) {
    %c0_i32 = arith.constant 0 : i32
    %c0_i32_0 = arith.constant 0 : i32
    %c0_i32_1 = arith.constant 0 : i32
    return %arg0, %c0_i32, %c0_i32_0 : i32, i32, i32
  }
  func.func @transform_3(%arg0: i32, %arg1: i32) -> (i32, i32, i32) {
    %c0_i32 = arith.constant 0 : i32
    %c0_i32_0 = arith.constant 0 : i32
    %c0_i32_1 = arith.constant 0 : i32
    return %arg0, %c0_i32, %c0_i32_0 : i32, i32, i32
  }
}

</mosaic_0001>

<bundles_post_ra>
// kernel: tpu_custom_call.1
= control target key start
LH: loop header
LB: loop body
LE: loop exit
PB: predicated region body
PF: predicated region fallthrough
CT: control target
= control target key end

     0   :  { %9 = vsyncpa [#allocation3], 0  ;;  %s1089_s0 = inlined_call_operand.hbm [shape: f32[16,128], index: 0, kind: input, shape index: {}]   ;;  %s1090_s1 = inlined_call_operand.hbm [shape: f32[16,128], index: 1, kind: input, shape index: {}]   ;;  %s1091_s2 = inlined_call_operand.hbm [shape: f32[2,8,128], index: 2, kind: output, shape index: {0}]   ;;  %s1092_s3 = inlined_call_operand.hbm [shape: s32[2,8,128], index: 3, kind: output, shape index: {1}]  }
   0x1   :  { %11 = vsyncpa [#allocation3 + $0x1], 0 }
   0x2   :  { %12 = vsyncpa [#allocation6], 0 }
   0x3   :  { %14 = vsyncpa [#allocation6 + $0x1], 0 }
   0x4   :  { %15 = vsyncpa [#allocation4], 0 }
   0x5   :  { %17 = vsyncpa [#allocation4 + $0x1], 0 }
   0x6   :  { %18 = vsyncpa [#allocation9], 0 }
   0x7   :  { %20 = vsyncpa [#allocation9 + $0x1], 0  ;;  %s881_s12 = smov 0   ;;  %s883_s13 = smov 0  }
   0x8   :  { %s885_s14 = smov 0   ;;  %s887_s15 = smov 0  }
   0x9   :  { %s889_s16 = smov 0   ;;  %s891_s17 = smov 0  }
   0xa   :  { %s893_s18 = smov 0   ;;  %s895_s19 = smov 0  }
   0xb LB: > { %s520_s20 = sadd.s32 4294967295, %s849_s19   ;;  %s521_s21 = sadd.s32 4294967294, %s849_s19   ;;  %s849_s19 = sphi %s895_s19, %s26_s19   ;;  %s845_s18 = sphi %s893_s18, %s1104_s18   ;;  %s841_s17 = sphi %s891_s17, %s1103_s17   ;;  %s837_s16 = sphi %s889_s16, %s1079_s16   ;;  %s833_s15 = sphi %s887_s15, %s1102_s15   ;;  %s829_s14 = sphi %s885_s14, %s1101_s14   ;;  %s825_s13 = sphi %s883_s13, %s1100_s13   ;;  %s821_s12 = sphi %s881_s12, %s1099_s12  }
   0xc   : > { %s38_s22 = sadd.s32 1, %s845_s18  ;;  %p818_p1 = scmp.ne.s32.totalorder %s837_s16, 0 }
   0xd   : > { %p40_p0 = scmp.ge.s32.totalorder %s38_s22, 2  ;;  %p59_p2 = scmp.eq.s32.totalorder %s849_s19, 0 }
   0xe   : > { %p64_p3 = scmp.ne.s32.totalorder %s837_s16, %s833_s15  ;;  %p65_p5 = scmp.eq.s32.totalorder %s520_s20, 0 }
   0xf   : > { %s1106_s22 = smov (%p40_p0, %s38_s22), 0  ;;  %p927_p4 = por %p818_p1, %p59_p2 }
  0x10   : > { %p931_p6 = por %p65_p5, %p64_p3  ;;  %s106_s25 = ssub.s32 %s845_s18, %s1106_s22 }
  0x11   : > { %p107_p7 = scmp.eq.s32.totalorder %s106_s25, 0  ;;  %s109_s26 = sadd.s32 1, %s829_s14 }
  0x12   : > { %p119_p8 = scmp.ne.s32.totalorder %s829_s14, %s825_s13  ;;  %p120_p9 = scmp.eq.s32.totalorder %s520_s20, 1 }
  0x13   : > { %s939_s27 = scalar_select %p107_p7, %s829_s14, %s109_s26  }
  0x14   : > { %p125_p10 = scmp.ne.s32.totalorder %s825_s13, %s821_s12  ;;  %p126_p11 = scmp.eq.s32.totalorder %s521_s21, 1 }
  0x15   : > { %p945_p12 = por %p120_p9, %p119_p8  ;;  %p523_p13 = scmp.ge.s32.totalorder %s849_s19, 2 }
  0x16   : > { %p950_p0 = por %p126_p11, %p125_p10  ;;  %p568_p1 = scmp.lt.s32.totalorder %s849_s19, 2 }
  0x17   : > { %s185_s5 = sshll.u32 %s1089_s0, 4  ;;  %s851_s6 = smov [#allocation2]   ;;  %s186_s5 = int_to_ptr.hbm [resolvable:$true] %s185_s5 }
  0x18   : > { %s187_s7 = sshll.u32 %s851_s6, 4  ;;  %p960_p2 = pnand %p568_p1, %p927_p4  ;;  %s188_s7 = int_to_ptr.vmem [resolvable:$true] %s187_s7 }
  0x19   : > { %p530_p3 = scmp.ge.s32.totalorder %s849_s19, 1  ;;  %p220_p5 = scmp.lt.s32.totalorder %s849_s19, 3 }
  0x1a   : > { %s650_s9 = sshra.s32 %s186_s5, 4  ;;  %p654_p8 = pneg %p960_p2  ;;  %s651_s9 = int_to_ptr.hbm [resolvable:$true] %s650_s9 }
  0x1b   : > { %s652_s10 = scalar_lea.hbm %s651_s9, 16  ;;  %s657_s20 = scalar_lea.hbm %s1089_s0, 16 }
  0x1c   : > { %p653_p7 = scmp.ne.s32.totalorder %s651_s9, %s652_s10  ;;  %p659_p4 = scmp.lt.s32.totalorder %s657_s20, %s652_s10 }
  0x1e   : > { %p655_p9 = pnand %p654_p8, %p653_p7 }
  0x20   : > { %p656_p10 = pneg %p655_p9 }
  0x22   : > { %p661_p11 = pnand %p659_p4, %p656_p10 }
  0x24   : > { %664 = shalt.err (!%p661_p11)
}
  0x25   : > { %s852_s21 = smov 128   ;;  %s853_s23 = smov 8  }
  0x26   : > { %557 = dma.hbm_to_vmem [thread:$0]  (!%p960_p2), %s186_s5, 256, %s188_s7, [#allocation3], %s852_s21, %s852_s21, %s853_s23  }
  0x27   : > { %p980_p1 = pnand %p530_p3, %p220_p5  ;;  %s210_s4 = sshll.u32 %s1090_s1, 4  ;;  %s211_s4 = int_to_ptr.hbm [resolvable:$true] %s210_s4 }
  0x28   : > { %s854_s6 = smov [#allocation5]   ;;  %s680_s10 = sshra.s32 %s211_s4, 4  ;;  %s681_s10 = int_to_ptr.hbm [resolvable:$true] %s680_s10 }
  0x29   : > { %s212_s9 = sshll.u32 %s854_s6, 4  ;;  %s682_s11 = scalar_lea.hbm %s681_s10, 16  ;;  %s213_s9 = int_to_ptr.vmem [resolvable:$true] %s212_s9 }
  0x2a   : > { %p683_p7 = scmp.ne.s32.totalorder %s681_s10, %s682_s11  ;;  %s687_s15 = scalar_lea.hbm %s1090_s1, 16 }
  0x2b   : > { %p689_p3 = scmp.lt.s32.totalorder %s687_s15, %s682_s11 }
  0x2c   : > { %p685_p9 = pnand %p683_p7, %p654_p8 }
  0x2e   : > { %p686_p10 = pneg %p685_p9 }
  0x30   : > { %p691_p5 = pnand %p689_p3, %p686_p10 }
  0x32   : > { %694 = shalt.err (!%p691_p5)
}
  0x33   : > { %560 = dma.hbm_to_vmem [thread:$0]  (!%p960_p2), %s211_s4, 256, %s213_s9, [#allocation6], %s852_s21, %s852_s21, %s853_s23  }
  0x34   : > { %224 = sbr.rel (%p980_p1) target bundleno = 132 (0x84), region = 28  ;;  %s226_s20 = sand.u32 (!%p980_p1), 1, %s837_s16  }
  0x35   : > { %s531_s26 = sshll.u32 (!%p980_p1), %s226_s20, 4  ;;  %s227_s30 = scalar_lea.sflag (!%p980_p1), [#allocation3], %s226_s20 }
  0x36   : > { %s230_s6 = scalar_lea.vmem (!%p980_p1), [#allocation2], %s531_s26 }
  0x39   : > { %803 = dma.done.wait (%p931_p6), %s227_s30, 256  }
  0x3a   : > { %805 = vsyncadd (%p931_p6), %s227_s30, 4294967040  ;;  %s237_s10 = scalar_lea.sflag [#allocation6], %s226_s20  ;;  %s240_s11 = scalar_lea.vmem [#allocation5], %s531_s26 }
  0x3b   : > { %807 = dma.done.wait (%p931_p6), %s237_s10, 256  }
  0x3c   : > { %809 = vsyncadd (%p931_p6), %s237_s10, 4294967040  ;;  %s1007_s8 = sand.u32 1, %s825_s13   ;;  %s535_s21 = sshll.u32 %s841_s17, 4  ;;  %v855_v0 = vmov 0.0   ;;  %v856_v1 = vmov 0   ;;  %v288_v2 = vld [vmem:[%s240_s11] sm:$0xff] }
  0x3d   : > { %s533_s23 = sshll.u32 %s1007_s8, 3  ;;  %s1011_s25 = ssub.s32 16, %s535_s21  ;;  %v289_v3 = vld [vmem:[%s240_s11 + $0x8] sm:$0xff]  ;;  %v290_v4 = vld [vmem:[%s230_s6] sm:$0xff] }
  0x3e   : > { %s1013_s4 = scalar_lea.vmem [#allocation7], %s533_s23  ;;  %s1016_s9 = scalar_lea.vmem [#allocation8], %s533_s23  ;;  %v291_v5 = vld [vmem:[%s230_s6 + $0x8] sm:$0xff] }
  0x3f   : > { %286 = vst [vmem:[%s1013_s4] sm:$0xff] %v855_v0  ;;  %p536_p6 = scmp.lt.s32.totalorder %s1011_s25, 16 }
  0x40   : > { %287 = vst [vmem:[%s1016_s9] sm:$0xff] %v856_v1 }
  0x41   : > { %298 = sbr.rel (%p536_p6) target bundleno = 81 (0x51), region = 44 }
  0x46   : > { %vm299_vm0 = vcmp.ne.f32.partialorder %v288_v2, %v288_v2  ;;  %vm300_vm1 = vcmp.ne.f32.partialorder %v289_v3, %v289_v3  ;;  %v303_v6 = vsub.f32 %v288_v2, %v290_v4  ;;  %vm857_vm2 = vmmov 1   ;;  %v309_v17 = vld [vmem:[%s1013_s4] sm:$0xff] }
  0x47   : > { %vm301_vm3 = vmxor %vm299_vm0, %vm857_vm2  ;;  %v304_v7 = vsub.f32 %v289_v3, %v291_v5  ;;  %v858_v9 = vmov 0   ;;  %v313_v12 = vld [vmem:[%s1016_s9] sm:$0xff] }
  0x48   : > { %vm302_vm4 = vmxor %vm300_vm1, %vm857_vm2  ;;  %v305_v8 = vand.u32 2147483647, %v303_v6  ;;  %v314_v10 = vsel %vm301_vm3, 1, %v858_v9 }
  0x49   : > { %v306_v11 = vand.u32 2147483647, %v304_v7  ;;  %v315_v13 = vsel %vm302_vm4, 1, %v858_v9 }
  0x4a   : > { %v307_v14 = vsel %vm301_vm3, %v305_v8, 0.0  ;;  %v316_v15 = vadd.s32 %v315_v13, %v314_v10 }
  0x4b   : > { %v308_v16 = vsel %vm302_vm4, %v306_v11, 0.0 }
  0x4c   : > { %v310_v18 = vadd.f32 %v308_v16, %v307_v14  ;;  %v317_v19 = vadd.s32 %v316_v15, %v313_v12 }
  0x4e   : > { %v311_v20 = vadd.f32 %v310_v18, %v309_v17  ;;  %318 = vst [vmem:[%s1016_s9] sm:$0xff] %v317_v19 }
  0x50   : > { %312 = vst [vmem:[%s1013_s4] sm:$0xff] %v311_v20 }
  0x51 PF: > { %p537_p2 = scmp.ge.s32.totalorder %s1011_s25, 16 }
  0x53   : > { %322 = sbr.rel (%p537_p2) target bundleno = 103 (0x67), region = 48 }
  0x58   : > { %v323_v21 = vlaneseq  ;;  %v326_v22 = vstv %s1011_s25  ;;  %vm329_vm5 = vcmp.ne.f32.partialorder %v288_v2, %v288_v2  ;;  %vm330_vm6 = vcmp.ne.f32.partialorder %v289_v3, %v289_v3  ;;  %v341_v33 = vld [vmem:[%s1013_s4] sm:$0xff]  ;;  %v345_v34 = vld [vmem:[%s1016_s9] sm:$0xff] }
  0x59   : > { %v335_v23 = vsub.f32 %v288_v2, %v290_v4  ;;  %v336_v24 = vsub.f32 %v289_v3, %v291_v5  ;;  %vm859_vm7 = vmmov 1   ;;  %v860_v30 = vmov 0  }
  0x5a   : > { %v324_v25 = vshrl.u32 %v323_v21, 7  ;;  %vm331_vm8 = vmxor %vm329_vm5, %vm859_vm7 }
  0x5b   : > { %v337_v26 = vand.u32 2147483647, %v335_v23  ;;  %vm332_vm10 = vmxor %vm330_vm6, %vm859_vm7  ;;  %v338_v28 = vand.u32 2147483647, %v336_v24 }
  0x5c   : > { %v325_v27 = vadd.s32 8, %v324_v25  ;;  %vm327_vm9 = vcmp.lt.s32.totalorder %v324_v25, %v326_v22 }
  0x5d   : > { %vm333_vm11 = vmand %vm327_vm9, %vm331_vm8 }
  0x5e   : > { %vm328_vm12 = vcmp.lt.s32.totalorder %v325_v27, %v326_v22  ;;  %v339_v29 = vsel %vm333_vm11, %v337_v26, 0.0  ;;  %v346_v31 = vsel %vm333_vm11, 1, %v860_v30 }
  0x5f   : > { %vm334_vm13 = vmand %vm328_vm12, %vm332_vm10 }
  0x60   : > { %v340_v32 = vsel %vm334_vm13, %v338_v28, 0.0  ;;  %v347_v35 = vsel %vm334_vm13, 1, %v860_v30 }
  0x61   : > { %v342_v36 = vadd.f32 %v340_v32, %v339_v29  ;;  %v348_v37 = vadd.s32 %v347_v35, %v346_v31 }
  0x63   : > { %v343_v38 = vadd.f32 %v342_v36, %v341_v33  ;;  %v349_v39 = vadd.s32 %v348_v37, %v345_v34 }
  0x65   : > { %344 = vst [vmem:[%s1013_s4] sm:$0xff] %v343_v38 }
  0x66   : > { %350 = vst [vmem:[%s1016_s9] sm:$0xff] %v349_v39 }
  0x67 PF: > { %s540_s24 = sshll.u32 %s841_s17, 3  ;;  %s369_s20 = sshll.u32 %s1013_s4, 4  ;;  %s370_s20 = int_to_ptr.vmem [resolvable:$true] %s369_s20 }
  0x68   : > { %s367_s15 = scalar_lea.hbm %s1091_s2, %s540_s24  ;;  %s352_s30 = scalar_lea.sflag [#allocation4], %s1007_s8 }
  0x69   : > { %s371_s26 = sshll.u32 %s367_s15, 4  ;;  %s730_s17 = scalar_lea.hbm %s1091_s2, 16  ;;  %s372_s26 = int_to_ptr.hbm [resolvable:$true] %s371_s26 }
  0x6a   : > { %s724_s6 = sshra.s32 %s372_s26, 4  ;;  %s725_s6 = int_to_ptr.hbm [resolvable:$true] %s724_s6 }
  0x6b   : > { %s726_s10 = scalar_lea.hbm %s725_s6, 8  ;;  %p731_p1 = scmp.lt.s32.totalorder %s725_s6, %s1091_s2 }
  0x6c   : > { %p727_p8 = scmp.ne.s32.totalorder %s725_s6, %s726_s10  ;;  %p732_p7 = scmp.lt.s32.totalorder %s730_s17, %s726_s10 }
  0x6e   : > { %p728_p4 = pnand %p727_p8, %p945_p12  ;;  %p733_p9 = por %p732_p7, %p731_p1 }
  0x70   : > { %p729_p11 = pneg %p728_p4 }
  0x72   : > { %p734_p10 = pnand %p733_p9, %p729_p11 }
  0x74   : > { %737 = shalt.err (!%p734_p10)
}
  0x75   : > { %550 = dma.vmem_to_hbm [thread:$0]  (%p945_p12), %s370_s20, 128, %s372_s26, %s352_s30  }
  0x76   : > { %s381_s7 = scalar_lea.hbm %s1092_s3, %s540_s24  ;;  %s383_s15 = sshll.u32 %s1016_s9, 4  ;;  %s384_s15 = int_to_ptr.vmem [resolvable:$true] %s383_s15 }
  0x77   : > { %s385_s11 = sshll.u32 %s381_s7, 4  ;;  %s357_s21 = scalar_lea.sflag [#allocation9], %s1007_s8  ;;  %s386_s11 = int_to_ptr.hbm [resolvable:$true] %s385_s11 }
  0x78   : > { %s752_s6 = sshra.s32 %s386_s11, 4  ;;  %s758_s20 = scalar_lea.hbm %s1092_s3, 16  ;;  %s753_s6 = int_to_ptr.hbm [resolvable:$true] %s752_s6 }
  0x79   : > { %s754_s10 = scalar_lea.hbm %s753_s6, 8  ;;  %p759_p2 = scmp.lt.s32.totalorder %s753_s6, %s1092_s3 }
  0x7a   : > { %p755_p3 = scmp.ne.s32.totalorder %s753_s6, %s754_s10  ;;  %p760_p8 = scmp.lt.s32.totalorder %s758_s20, %s754_s10 }
  0x7c   : > { %p756_p5 = pnand %p755_p3, %p945_p12  ;;  %p761_p4 = por %p760_p8, %p759_p2 }
  0x7e   : > { %p757_p6 = pneg %p756_p5 }
  0x80   : > { %p762_p11 = pnand %p761_p4, %p757_p6 }
  0x82   : > { %765 = shalt.err (!%p762_p11)
}
  0x83   : > { %551 = dma.vmem_to_hbm [thread:$0]  (%p945_p12), %s384_s15, 128, %s386_s11, %s357_s21  }
  0x84 PF: > { %s397_s8 = sand.u32 1, %s821_s12   ;;  %p562_p1 = pnand %p523_p13, %p950_p0 }
  0x85   : > { %s398_s9 = scalar_lea.sflag [#allocation4], %s397_s8 }
  0x86   : > { %p563_p7 = pneg %p562_p1 }
  0x88   : > { %811 = dma.done.wait (%p563_p7), %s398_s9, 128  }
  0x89   : > { %813 = vsyncadd (%p563_p7), %s398_s9, 4294967168  ;;  %s408_s24 = scalar_lea.sflag [#allocation9], %s397_s8 }
  0x8a   : > { %815 = dma.done.wait (%p563_p7), %s408_s24, 128  }
  0x8b   : > { %817 = vsyncadd (%p563_p7), %s408_s24, 4294967168  ;;  %s26_s19 = sadd.s32 1, %s849_s19   ;;  %s1099_s12 = smov %s825_s13 }
  0x8c   : > { %p23_p9 = scmp.ge.s32.totalorder %s26_s19, 4   ;;  %s1100_s13 = smov %s829_s14 }
  0x8d   : > { %s1101_s14 = smov %s939_s27  ;;  %s1102_s15 = smov %s837_s16 }
  0x8e   : > { %s1079_s16 = smov 0   ;;  %s1103_s17 = smov %s845_s18 }
  0x8f   : > { %s1104_s18 = smov %s1106_s22  ;;  %25 = sbr.rel (!%p23_p9) target bundleno = 11 (0xb), region = 115 }
  0x94   :  { %414 = vsyncpa [#allocation3], 1 }
  0x95   :  { %416 = vsyncpa [#allocation3 + $0x1], 1 }
  0x96   :  { %417 = vsyncpa [#allocation6], 1 }
  0x97   :  { %419 = vsyncpa [#allocation6 + $0x1], 1 }
  0x98   :  { %420 = vsyncpa [#allocation4], 1 }
  0x99   :  { %422 = vsyncpa [#allocation4 + $0x1], 1 }
  0x9a   :  { %423 = vsyncpa [#allocation9], 1 }
  0x9b   :  { %425 = vsyncpa [#allocation9 + $0x1], 1 }

</bundles_post_ra>
